<compile_context>
chip_gen: v5e
topology: v5e:2x2
jax: 0.10.0
libtpu: 0.0.40
codegen_flags: <defaults>
</compile_context>

<pallas_src>
import math
from functools import partial

import numpy as np
import jax
import jax.numpy as jnp
from jax import lax
from jax.experimental import pallas as pl
from jax.experimental.pallas import tpu as pltpu


# ----------------------------- kernel helpers -----------------------------

def _ln(x, g, b, eps):
    """LayerNorm over the last axis; g/b are (1, D)."""
    mu = jnp.mean(x, axis=-1, keepdims=True)
    var = jnp.mean(jnp.square(x - mu), axis=-1, keepdims=True)
    return (x - mu) * lax.rsqrt(var + eps) * g + b


def _gelu(y):
    # TODO(synk): torch nn.GELU() default is exact erf; tanh approximation
    # used here (guaranteed Mosaic lowering via the EUP tanh path).
    c = math.sqrt(2.0 / math.pi)
    return 0.5 * y * (1.0 + jnp.tanh(c * (y + 0.044715 * y * y * y)))


def _block_compute(x, n1g, n1b, qkvw, qkvb, projw, projb,
                   n2g, n2b, fc1w, fc1b, fc2w, fc2b, *, heads, eps):
    """One pre-norm timm ViT block on an (N, D) f32 slab, fully fused."""
    N, D = x.shape
    Dh = D // heads
    scale = Dh ** -0.5

    # --- attention ---
    h = _ln(x, n1g, n1b, eps)
    qkv = jnp.dot(h, qkvw, preferred_element_type=jnp.float32) + qkvb  # (N, 3D)

    outs = []
    for hd in range(heads):  # static unrolled head loop, lane slices
        # Scale q (N x Dh) instead of the score matrix (N x N): fewer VPU ops.
        q = qkv[:, hd * Dh:(hd + 1) * Dh] * scale
        k = qkv[:, D + hd * Dh:D + (hd + 1) * Dh]
        v = qkv[:, 2 * D + hd * Dh:2 * D + (hd + 1) * Dh]
        s = lax.dot_general(q, k, (((1,), (1,)), ((), ())),
                            preferred_element_type=jnp.float32)
        s = s - jnp.max(s, axis=-1, keepdims=True)
        p = jnp.exp(s)
        p = p * pl.reciprocal(jnp.sum(p, axis=-1, keepdims=True), approx=True)
        outs.append(jnp.dot(p, v, preferred_element_type=jnp.float32))
    attn = jnp.concatenate(outs, axis=-1)                    # (N, D) lane-dense
    attn = jnp.dot(attn, projw, preferred_element_type=jnp.float32) + projb
    x = x + attn

    # --- MLP ---
    h2 = _ln(x, n2g, n2b, eps)
    m = jnp.dot(h2, fc1w, preferred_element_type=jnp.float32) + fc1b
    m = _gelu(m)
    m = jnp.dot(m, fc2w, preferred_element_type=jnp.float32) + fc2b
    return x + m


def _make_block_kernel(*, heads, eps, has_final_norm, cls_only):
    """Build a block kernel: refs = (x, 12 blk weights[, 2 norm weights], out)."""

    def kern(x_ref, *refs):
        o_ref = refs[-1]
        vals = [r[...] for r in refs[:-1]]
        if has_final_norm:
            blk_w, fng, fnb = vals[:-2], vals[-2], vals[-1]
        else:
            blk_w = vals
        y = _block_compute(x_ref[0].astype(jnp.float32), *blk_w,
                           heads=heads, eps=eps)
        if has_final_norm:
            y = _ln(y, fng, fnb, eps)
        if cls_only:
            o_ref[0] = y[0:1, :].astype(o_ref.dtype)   # cls row only
        else:
            o_ref[0] = y.astype(o_ref.dtype)

    return kern


def _embed_kernel(xp_ref, w_ref, b_ref, cls_ref, pos_ref, o_ref):
    """Patchify matmul + cls concat + pos-embed add for one image."""
    tok = jnp.dot(xp_ref[0].astype(jnp.float32), w_ref[...],
                  preferred_element_type=jnp.float32) + b_ref[...]
    full = jnp.concatenate([cls_ref[...], tok], axis=0) + pos_ref[...]
    o_ref[0] = full.astype(o_ref.dtype)


# ------------------------------ call wrappers ------------------------------

def _rep_spec(a):
    """Whole-array block, same block index every grid step (stays resident)."""
    nd = a.ndim
    return pl.BlockSpec(a.shape, lambda b, _nd=nd: (0,) * _nd)


def _block_weights(p):
    D = p["qkv_w"].shape[0]
    H = p["fc1_w"].shape[1]
    return (p["norm1_g"].reshape(1, D), p["norm1_b"].reshape(1, D),
            p["qkv_w"], p["qkv_b"].reshape(1, 3 * D),
            p["proj_w"], p["proj_b"].reshape(1, D),
            p["norm2_g"].reshape(1, D), p["norm2_b"].reshape(1, D),
            p["fc1_w"], p["fc1_b"].reshape(1, H),
            p["fc2_w"], p["fc2_b"].reshape(1, D))


def fused_block(x, blk, *, heads, eps=1e-6, final_norm=None, cls_only=False):
    """Whole transformer block (optionally + final LayerNorm) in one pallas_call.

    x: (B, N, D).  Grid = (B,), marked "parallel" so it can shard across the
    two TensorCores on v7x.  If cls_only=True, only the cls-token row is
    written back to HBM (output shape (B, 1, D)).  timm ViT LN eps = 1e-6.
    """
    B, N, D = x.shape
    weights = _block_weights(blk)
    if final_norm is not None:
        weights = weights + (final_norm[0].reshape(1, D),
                             final_norm[1].reshape(1, D))
    kern = _make_block_kernel(heads=heads, eps=eps,
                              has_final_norm=final_norm is not None,
                              cls_only=cls_only)

    in_spec = pl.BlockSpec((1, N, D), lambda b: (b, 0, 0))
    n_out = 1 if cls_only else N
    out_spec = pl.BlockSpec((1, n_out, D), lambda b: (b, 0, 0))
    return pl.pallas_call(
        kern,
        out_shape=jax.ShapeDtypeStruct((B, n_out, D), x.dtype),
        grid=(B,),
        in_specs=[in_spec] + [_rep_spec(w) for w in weights],
        out_specs=out_spec,
        compiler_params=pltpu.CompilerParams(
            dimension_semantics=("parallel",)),
    )(x, *weights)


def fused_patch_embed(x_img, params, *, patch):
    """Conv2d(kernel=stride=patch) + cls token + pos embed, one pallas_call."""
    B, C, H, W = x_img.shape
    D = params["patch_w"].shape[0]
    ph, pw = H // patch, W // patch
    P = ph * pw
    Cpp = C * patch * patch
    # Host-side patchify layout shuffle only (single XLA transpose).
    xp = x_img.reshape(B, C, ph, patch, pw, patch).transpose(0, 2, 4, 1, 3, 5)
    xp = xp.reshape(B, P, Cpp)
    wm = params["patch_w"].reshape(D, Cpp).T
    b = params["patch_b"].reshape(1, D)
    cls = params["cls_token"].reshape(1, D)
    pos = params["pos_embed"].reshape(P + 1, D)

    xp_spec = pl.BlockSpec((1, P, Cpp), lambda i: (i, 0, 0))
    out_spec = pl.BlockSpec((1, P + 1, D), lambda i: (i, 0, 0))
    return pl.pallas_call(
        _embed_kernel,
        out_shape=jax.ShapeDtypeStruct((B, P + 1, D), x_img.dtype),
        grid=(B,),
        in_specs=[xp_spec, _rep_spec(wm), _rep_spec(b), _rep_spec(cls),
                  _rep_spec(pos)],
        out_specs=out_spec,
        compiler_params=pltpu.CompilerParams(
            dimension_semantics=("parallel",)),
    )(xp, wm, b, cls, pos)


# ------------------------------ model pieces ------------------------------

def init_vit_params(key, *, img=16, patch=4, in_chans=4, dim=32, depth=2,
                    mlp_ratio=4):
    keys = iter(jax.random.split(key, 64))

    def nrm(shape, scale=0.02):
        return (scale * jax.random.normal(next(keys), shape)).astype(jnp.float32)

    n_patches = (img // patch) ** 2
    hidden = dim * mlp_ratio
    params = {
        "patch_w": nrm((dim, in_chans, patch, patch)),
        "patch_b": nrm((dim,)),
        "cls_token": nrm((1, 1, dim)),
        "pos_embed": nrm((1, n_patches + 1, dim)),
        "norm_g": jnp.ones((dim,), jnp.float32),
        "norm_b": jnp.zeros((dim,), jnp.float32),
        "blocks": [],
    }
    for _ in range(depth):
        params["blocks"].append({
            "norm1_g": jnp.ones((dim,), jnp.float32),
            "norm1_b": jnp.zeros((dim,), jnp.float32),
            "qkv_w": nrm((dim, 3 * dim)), "qkv_b": nrm((3 * dim,)),
            "proj_w": nrm((dim, dim)), "proj_b": nrm((dim,)),
            "norm2_g": jnp.ones((dim,), jnp.float32),
            "norm2_b": jnp.zeros((dim,), jnp.float32),
            "fc1_w": nrm((dim, hidden)), "fc1_b": nrm((hidden,)),
            "fc2_w": nrm((hidden, dim)), "fc2_b": nrm((dim,)),
        })
    return params


def vit_with_jpm_forward(x_img, params, *, patch=4, heads=4,
                         shift_offset=5, shuffle_group=4, perm=None):
    B = x_img.shape[0]
    D = params["cls_token"].shape[-1]

    # --- self.vit(x): patch embed + cls + pos embed + blocks[:-1] ---
    x = fused_patch_embed(x_img, params, patch=patch)
    for blk in params["blocks"][:-1]:
        x = fused_block(x, blk, heads=heads)

    final_norm = (params["norm_g"], params["norm_b"])
    last_blk = params["blocks"][-1]

    # --- global branch: blocks[-1] + norm, cls token only (one fused call) ---
    gf = fused_block(x, last_blk, heads=heads, final_norm=final_norm,
                     cls_only=True)[:, 0]

    # --- JPM local branch: shift + shuffle + grouped re-attention ---
    # NOTE: jpm / jpm_norm are deepcopies of blocks[-1] / norm at init time,
    # so reusing those params matches the reference for untrained weights.
    cls_token = x[:, 0:1]                                   # (B, 1, D)
    feat_len = x.shape[1] - 1
    local = jnp.concatenate(
        [x[:, shift_offset + 1:], x[:, 1:shift_offset + 1]], axis=1)
    if perm is None:
        perm = np.arange(feat_len)
    local = local[:, np.asarray(perm)]                      # shuffled tokens

    group_idxs = np.linspace(0, feat_len, shuffle_group + 1, dtype=int)
    sizes = np.diff(group_idxs)

    if len(set(sizes.tolist())) == 1:
        # Fold the shuffle_group groups into the batch axis so all JPM passes
        # run in ONE pallas_call (weights DMA'd once, grid = B*groups parallel).
        g = int(sizes[0])
        grouped = local[:, :shuffle_group * g].reshape(B, shuffle_group, g, D)
        cls_rep = jnp.broadcast_to(cls_token[:, None], (B, shuffle_group, 1, D))
        jpm_in = jnp.concatenate([cls_rep, grouped], axis=2)
        jpm_in = jpm_in.reshape(B * shuffle_group, g + 1, D)
        jpm_out = fused_block(jpm_in, last_blk, heads=heads,
                              final_norm=final_norm, cls_only=True)[:, 0]
        jpm_out = jpm_out.reshape(B, shuffle_group, D)
        jpm_feats = [jpm_out[:, i] for i in range(shuffle_group)]
    else:
        # Unequal group sizes: fall back to per-group fused calls.
        jpm_feats = []
        for i in range(shuffle_group):
            seg = local[:, int(group_idxs[i]):int(group_idxs[i + 1])]
            feat = jnp.concatenate([cls_token, seg], axis=1)
            jpm_feats.append(
                fused_block(feat, last_blk, heads=heads,
                            final_norm=final_norm, cls_only=True)[:, 0])

    return [gf] + jpm_feats


if __name__ == "__main__":
    key = jax.random.PRNGKey(0)
    kp, kx = jax.random.split(key)
    params = init_vit_params(kp, img=16, patch=4, in_chans=4, dim=32, depth=2)
    x = jax.random.normal(kx, (2, 4, 16, 16), dtype=jnp.float32)

    # Original code uses an unseeded np.random.permutation; fixed seed here
    # for determinism.
    perm = np.random.RandomState(0).permutation(16)

    feats = vit_with_jpm_forward(
        x, params, patch=4, heads=4, shift_offset=5, shuffle_group=4, perm=perm)
    feats = jax.block_until_ready(feats)

    assert len(feats) == 5                      # [global] + 4 JPM group feats
    assert all(f.shape == (2, 32) for f in feats)
    assert all(jnp.isfinite(f).all() for f in feats)
    print("KERNEL_OK")
</pallas_src>

<mosaic_0001>
module attributes {stable_mosaic.version = 11 : i64} {
  func.func @_embed_kernel(%arg0: i32, %arg1: memref<1x16x64xf32, #tpu.memory_space<vmem>>, %arg2: memref<64x32xf32, #tpu.memory_space<vmem>>, %arg3: memref<1x32xf32, #tpu.memory_space<vmem>>, %arg4: memref<1x32xf32, #tpu.memory_space<vmem>>, %arg5: memref<17x32xf32, #tpu.memory_space<vmem>>, %arg6: memref<1x17x32xf32, #tpu.memory_space<vmem>>) attributes {dimension_semantics = [#tpu.dimension_semantics<parallel>], iteration_bounds = array<i64: 2>, scalar_prefetch = 0 : i64, scratch_operands = 0 : i64, tpu.core_type = #tpu.core_type<tc>, window_params = [{transform_indices = @transform_0, window_bounds = array<i64: 1, 16, 64>}, {pipeline_mode = #tpu.pipeline_mode<synchronous>, transform_indices = @transform_1, window_bounds = array<i64: 64, 32>}, {pipeline_mode = #tpu.pipeline_mode<synchronous>, transform_indices = @transform_2, window_bounds = array<i64: 1, 32>}, {pipeline_mode = #tpu.pipeline_mode<synchronous>, transform_indices = @transform_3, window_bounds = array<i64: 1, 32>}, {pipeline_mode = #tpu.pipeline_mode<synchronous>, transform_indices = @transform_4, window_bounds = array<i64: 17, 32>}, {transform_indices = @transform_5, window_bounds = array<i64: 1, 17, 32>}]} {
    %c0 = arith.constant 0 : index
    %c0_0 = arith.constant 0 : index
    %c0_1 = arith.constant 0 : index
    %0 = vector.load %arg1[%c0, %c0_0, %c0_1] : memref<1x16x64xf32, #tpu.memory_space<vmem>>, vector<1x16x64xf32>
    %1 = vector.shape_cast %0 : vector<1x16x64xf32> to vector<16x64xf32>
    %c0_2 = arith.constant 0 : index
    %c0_3 = arith.constant 0 : index
    %2 = vector.load %arg2[%c0_2, %c0_3] : memref<64x32xf32, #tpu.memory_space<vmem>>, vector<64x32xf32>
    %cst = arith.constant dense<0.000000e+00> : vector<16x32xf32>
    %3 = tpu.matmul %1, %2, %cst {dimension_numbers = #tpu.dot_dimension_numbers<[1], [0], [0], [1], [0, 0, 1, 1], [], []>} : vector<16x64xf32>, vector<64x32xf32>, vector<16x32xf32> -> vector<16x32xf32>
    %c0_4 = arith.constant 0 : index
    %c0_5 = arith.constant 0 : index
    %4 = vector.load %arg3[%c0_4, %c0_5] : memref<1x32xf32, #tpu.memory_space<vmem>>, vector<1x32xf32>
    %5 = vector.broadcast %4 : vector<1x32xf32> to vector<16x32xf32>
    %6 = arith.addf %3, %5 : vector<16x32xf32>
    %c0_6 = arith.constant 0 : index
    %c0_7 = arith.constant 0 : index
    %7 = vector.load %arg4[%c0_6, %c0_7] : memref<1x32xf32, #tpu.memory_space<vmem>>, vector<1x32xf32>
    %8 = tpu.concatenate %7, %6 in 0 : vector<1x32xf32>, vector<16x32xf32> -> vector<17x32xf32>
    %c0_8 = arith.constant 0 : index
    %c0_9 = arith.constant 0 : index
    %9 = vector.load %arg5[%c0_8, %c0_9] : memref<17x32xf32, #tpu.memory_space<vmem>>, vector<17x32xf32>
    %10 = arith.addf %8, %9 : vector<17x32xf32>
    %c0_10 = arith.constant 0 : index
    %c0_11 = arith.constant 0 : index
    %c0_12 = arith.constant 0 : index
    %11 = vector.load %arg6[%c0_10, %c0_11, %c0_12] : memref<1x17x32xf32, #tpu.memory_space<vmem>>, vector<1x17x32xf32>
    %12 = vector.shape_cast %11 : vector<1x17x32xf32> to vector<17x32xf32>
    %13 = vector.shape_cast %10 : vector<17x32xf32> to vector<1x17x32xf32>
    tpu.vector_store %arg6[%c0_10, %c0_11, %c0_12], %13 {strides = array<i32>} : memref<1x17x32xf32, #tpu.memory_space<vmem>>, vector<1x17x32xf32>,
    return
  }
  func.func @transform_0(%arg0: i32) -> (i32, i32, i32) {
    %c0_i32 = arith.constant 0 : i32
    %c0_i32_0 = arith.constant 0 : i32
    %c0_i32_1 = arith.constant 0 : i32
    return %arg0, %c0_i32, %c0_i32_0 : i32, i32, i32
  }
  func.func @transform_1(%arg0: i32) -> (i32, i32) {
    %c0_i32 = arith.constant 0 : i32
    %c0_i32_0 = arith.constant 0 : i32
    %c0_i32_1 = arith.constant 0 : i32
    return %c0_i32, %c0_i32_0 : i32, i32
  }
  func.func @transform_2(%arg0: i32) -> (i32, i32) {
    %c0_i32 = arith.constant 0 : i32
    %c0_i32_0 = arith.constant 0 : i32
    %c0_i32_1 = arith.constant 0 : i32
    return %c0_i32, %c0_i32_0 : i32, i32
  }
  func.func @transform_3(%arg0: i32) -> (i32, i32) {
    %c0_i32 = arith.constant 0 : i32
    %c0_i32_0 = arith.constant 0 : i32
    %c0_i32_1 = arith.constant 0 : i32
    return %c0_i32, %c0_i32_0 : i32, i32
  }
  func.func @transform_4(%arg0: i32) -> (i32, i32) {
    %c0_i32 = arith.constant 0 : i32
    %c0_i32_0 = arith.constant 0 : i32
    %c0_i32_1 = arith.constant 0 : i32
    return %c0_i32, %c0_i32_0 : i32, i32
  }
  func.func @transform_5(%arg0: i32) -> (i32, i32, i32) {
    %c0_i32 = arith.constant 0 : i32
    %c0_i32_0 = arith.constant 0 : i32
    %c0_i32_1 = arith.constant 0 : i32
    return %arg0, %c0_i32, %c0_i32_0 : i32, i32, i32
  }
}

</mosaic_0001>

<bundles_post_ra>
// kernel: tpu_custom_call.1
= control target key start
LH: loop header
LB: loop body
LE: loop exit
PB: predicated region body
PF: predicated region fallthrough
CT: control target
= control target key end

     0   :  { %s415_s18 = smov 0   ;;  %s475_s0 = inlined_call_operand.vmem [shape: f32[2,16,64], index: 0, kind: input, shape index: {}]   ;;  %s476_s1 = inlined_call_operand.vmem [shape: f32[64,32], index: 1, kind: input, shape index: {}]   ;;  %s477_s2 = inlined_call_operand.vmem [shape: f32[1,32], index: 2, kind: input, shape index: {}]   ;;  %s478_s3 = inlined_call_operand.vmem [shape: f32[1,32], index: 3, kind: input, shape index: {}]   ;;  %s479_s4 = inlined_call_operand.vmem [shape: f32[17,32], index: 4, kind: input, shape index: {}]   ;;  %s480_s5 = inlined_call_operand.vmem [shape: f32[2,17,32], index: 5, kind: output, shape index: {}]  }
   0x1 LB: > { %s346_s19 = sadd.s32 4294967295, %s383_s18   ;;  %p350_p0 = scmp.ge.s32.totalorder %s383_s18, 1  ;;  %s383_s18 = sphi %s415_s18, %s15_s18  }
   0x2   : > { %p187_p1 = scmp.lt.s32.totalorder %s383_s18, 3 }
   0x4   : > { %p188_p2 = pnand %p350_p0, %p187_p1 }
   0x5   : > { %p215_p3 = scmp.lt.s32.totalorder (!%p188_p2), %s346_s19, 1 }
   0x6   : > { %191 = sbr.rel (%p188_p2) target bundleno = 162 (0xa2), region = 40 }
   0xb   : > { %v234_v0 = vld [vmem:[%s476_s1 + $0x38] sm:$0xff]  ;;  %v233_v1 = vld [vmem:[%s476_s1 + $0x30] sm:$0xff]  ;;  %v232_v2 = vld [vmem:[%s476_s1 + $0x28] sm:$0xff]  ;;  %s482_s19 = smov (!%p215_p3, %s346_s19), 1  ;;  %vm239_vm0 = vcmask 523264   ;;  %vm272_vm1 = vcmask 1040384  }
   0xc   : > { %254 = vmatpush.msra.mxu0 %v234_v0  ;;  %359 = vmatpush.msra.mxu1 %v234_v0  ;;  %v231_v3 = vld [vmem:[%s476_s1 + $0x20] sm:$0xff]  ;;  %v230_v4 = vld [vmem:[%s476_s1 + $0x18] sm:$0xff]  ;;  %s358_s30 = sshll.u32 %s482_s19, 4  ;;  %v229_v5 = vld [vmem:[%s476_s1 + $0x10] sm:$0xff]  ;;  %s367_s17 = smul.u32 24, %s482_s19  ;;  %vm289_vm2 = vcmask 253952  }
   0xd   : > { %v228_v6 = vld [vmem:[%s476_s1 + $0x8] sm:$0xff]  ;;  %s219_s12 = scalar_lea.vmem %s475_s0, %s358_s30  ;;  %v227_v7 = vld [vmem:[%s476_s1] sm:$0xff]  ;;  %v282_v16 = vld [vmem:[%s479_s4 + $0x10] sm:$0x1]  ;;  %vm286_vm3 = vcmask 261120  }
   0xe   : > { %255 = vmatpush.msra.mxu0 %v233_v1  ;;  %360 = vmatpush.msra.mxu1 %v233_v1  ;;  %v225_v8 = vld [vmem:[%s219_s12] sm:$0xff]  ;;  %v226_v9 = vld [vmem:[%s219_s12 + $0x8] sm:$0xff]  ;;  %s224_s29 = scalar_lea.vmem %s480_s5, %s367_s17 }
   0xf   : > { %v376_v10 = vld [vmem:[%s477_s2] ss:$0 sm:$0xff]  ;;  %v281_v20 = vld [vmem:[%s479_s4 + $0x8] sm:$0xff] }
  0x10   : > { %256 = vmatpush.msra.mxu0 %v232_v2  ;;  %361 = vmatpush.msra.mxu1 %v232_v2  ;;  %v269_v15 = vld [vmem:[%s478_s3] sm:$0x1] }
  0x11   : > { %v280_v18 = vld [vmem:[%s479_s4] sm:$0xff] }
  0x12   : > { %257 = vmatpush.msra.mxu0 %v231_v3  ;;  %362 = vmatpush.msra.mxu1 %v231_v3 }
  0x14   : > { %258 = vmatpush.msra.mxu0 %v230_v4  ;;  %363 = vmatpush.msra.mxu1 %v230_v4 }
  0x16   : > { %259 = vmatpush.msra.mxu0 %v229_v5  ;;  %364 = vmatpush.msra.mxu1 %v229_v5 }
  0x18   : > { %260 = vmatpush.msra.mxu0 %v228_v6  ;;  %365 = vmatpush.msra.mxu1 %v228_v6 }
  0x1a   : > { %261 = vmatpush.msra.mxu0 %v227_v7  ;;  %366 = vmatpush.msra.mxu1 %v227_v7 }
  0x1b   : > { %354 = vmatmul.msk.f32.vlgmr.msra.gmra.mxu0 %vm239_vm0, %v225_v8  ;;  %355 = vmatmul.msk.f32.vlgmr.msra.gmra.mxu1 %vm239_vm0, %v226_v9 }
  0x98   : > { %v263_v11 = vpop.f32.mrf.mxu0  ;;  %v266_v12 = vpop.f32.mrf.mxu1 }
  0x99   : > { %v264_v13 = vadd.f32 %v376_v10, %v263_v11  ;;  %v267_v14 = vadd.f32 %v376_v10, %v266_v12 }
  0x9b   : > { %v273_v17 = vrot.slane %v264_v13, 7  ;;  %v274_v19 = vrot.slane %v267_v14, 7 }
  0x9d   : > { %v279_v21 = vsel %vm272_vm1, %v269_v15, %v273_v17  ;;  %v275_v22 = vsel %vm272_vm1, %v273_v17, %v274_v19  ;;  %v285_v23 = vadd.f32 %v282_v16, %v274_v19 }
  0x9e   : > { %v283_v24 = vadd.f32 %v280_v18, %v279_v21  ;;  %v284_v25 = vadd.f32 %v281_v20, %v275_v22 }
  0x9f   : > { %290 = vst.msk [vmem:[%s224_s29 + $0x10] sm:$0x1] %vm289_vm2, %v285_v23 }
  0xa0   : > { %287 = vst.msk [vmem:[%s224_s29] sm:$0xff] %vm286_vm3, %v283_v24 }
  0xa1   : > { %288 = vst.msk [vmem:[%s224_s29 + $0x8] sm:$0xff] %vm286_vm3, %v284_v25 }
  0xa2 PF: > { %s15_s18 = sadd.s32 1, %s383_s18  }
  0xa3   : > { %p12_p4 = scmp.ge.s32.totalorder %s15_s18, 4  }
  0xa5   :  { %14 = sbr.rel (!%p12_p4) target bundleno = 1 (0x1), region = 70 }

</bundles_post_ra>
